<compile_context>
chip_gen: v7x
topology: tpu7x:2x2x1
jax: 0.10.0
libtpu: 0.0.40
codegen_flags: <defaults>
</compile_context>

<pallas_src>
import functools

import jax
import jax.numpy as jnp
from jax.experimental import pallas as pl
from jax.experimental.pallas import tpu as pltpu


def _mlp_head_kernel(x_ref, w1_ref, b1_ref, wdiff_ref, bdiff_ref, out_ref, acc_ref):
    """One (batch-tile, K-tile) grid step of log_softmax(fc3(relu(fc1(x))))."""
    k = pl.program_id(1)

    @pl.when(k == 0)
    def _():
        acc_ref[...] = jnp.zeros_like(acc_ref)

    # fc1 partial product: f32 x-tile cast to bf16 in-kernel (VPU, hidden under
    # DMA), bf16 weights, f32 accumulation on the MXU.
    acc_ref[...] += jnp.dot(
        x_ref[...].astype(jnp.bfloat16),
        w1_ref[...],
        preferred_element_type=jnp.float32,
    )

    @pl.when(k == pl.num_programs(1) - 1)
    def _():
        # f32 epilogue (VPU-friendly on all generations, incl. v5e).
        h = jnp.maximum(acc_ref[...] + b1_ref[...], 0.0)  # ReLU(fc1(x))

        # 2-class head: logit difference via VPU mul + row reduce (no MXU).
        d = jnp.sum(h * wdiff_ref[...], axis=-1, keepdims=True) + bdiff_ref[...]

        # log_softmax over 2 classes with a single (stable) softplus:
        #   out[:, 0] = -softplus(d),  out[:, 1] = d - softplus(d)
        sp = jnp.maximum(d, 0.0) + jnp.log(1.0 + jnp.exp(-jnp.abs(d)))
        sp_b = jnp.broadcast_to(sp, out_ref.shape)
        d_b = jnp.broadcast_to(d, out_ref.shape)
        col = jax.lax.broadcasted_iota(jnp.int32, out_ref.shape, 1)
        out_ref[...] = jnp.where(col == 0, -sp_b, d_b - sp_b).astype(out_ref.dtype)
        # TODO(synk): optionally emit a lane-dense (2, B_pad) output and
        # transpose in the wrapper if the class count ever grows.


@functools.lru_cache(maxsize=1)
def _vmem_budget_bytes():
    """Generation-aware VMEM budget (v7x: 64 MiB physical; v5e/v6e: 128 MiB)."""
    cap = 128 * 1024 * 1024
    try:
        info = pltpu.get_tpu_info()
        cap = int(getattr(info, "vmem_capacity_bytes", cap))
    except Exception:
        pass
    # Use ~half of physical VMEM, clamped to [32 MiB, 100 MiB].
    return max(32 * 1024 * 1024, min(cap // 2, 100 * 1024 * 1024))


def _tiles_fit(tb, tk, h, budget):
    x_bytes = 2 * tb * tk * 4      # double-buffered f32 x tile
    w_bytes = 2 * tk * h * 2       # double-buffered bf16 w1 slab
    acc_bytes = tb * h * 4         # f32 accumulator scratch
    misc = 4 * h * 4 + (1 << 16)   # biases / head vectors / slack
    return x_bytes + w_bytes + acc_bytes + misc <= budget


def _pick_batch_tile(b):
    """Multiple-of-8 batch tile; >=2 tiles when possible (v7x has 2 TCs)."""
    if b >= 256:
        return 128
    if b <= 8:
        return 8
    return min(128, max(8, (((b + 1) // 2) + 7) // 8 * 8))


def _pick_k_tile(d, tb, h, budget):
    """Largest K tile dividing D that fits the VMEM budget (prefers TK = D)."""
    if _tiles_fit(tb, d, h, budget):
        return d
    best = None
    for t in range(128, d, 128):
        if d % t == 0 and _tiles_fit(tb, t, h, budget):
            best = t
    if best is not None:
        return best
    # TODO(synk): pad D / support partial K blocks for awkward D; fall back to
    # the smallest 128-multiple divisor (or D itself) even if over the budget.
    for t in range(128, d, 128):
        if d % t == 0:
            return t
    return d


@jax.jit
def net_forward(x, w1, b1, w2, b2):
    B, D = x.shape
    H = w1.shape[1]

    budget = _vmem_budget_bytes()
    TB = _pick_batch_tile(B)
    TK = _pick_k_tile(D, TB, H, int(budget * 0.8))

    # Pad batch only when B is not a multiple of the batch tile.
    B_pad = -(-B // TB) * TB
    if B_pad != B:
        x = jnp.pad(x, ((0, B_pad - B), (0, 0)))

    # Weights/head vectors are tiny; cast/fold them once here.
    # TODO(synk): for a serving loop keep w1_bf / b1 / wdiff resident across
    # pallas_call invocations (cross-call prefetch) instead of per-call.
    w1_bf = w1.astype(jnp.bfloat16)
    b1_f = b1.reshape(1, H).astype(jnp.float32)
    wdiff = (w2[:, 1] - w2[:, 0]).reshape(1, H).astype(jnp.float32)
    b2f = b2.reshape(-1)
    bdiff = (b2f[1] - b2f[0]).reshape(1, 1).astype(jnp.float32)

    grid = (B_pad // TB, D // TK)

    out = pl.pallas_call(
        _mlp_head_kernel,
        out_shape=jax.ShapeDtypeStruct((B_pad, 2), jnp.float32),
        grid_spec=pltpu.PrefetchScalarGridSpec(
            num_scalar_prefetch=0,
            grid=grid,
            in_specs=[
                pl.BlockSpec((TB, TK), lambda b, k: (b, k)),   # x tile (f32)
                pl.BlockSpec((TK, H), lambda b, k: (k, 0)),    # w1 slab (bf16)
                pl.BlockSpec((1, H), lambda b, k: (0, 0)),     # b1
                pl.BlockSpec((1, H), lambda b, k: (0, 0)),     # w2[:,1]-w2[:,0]
                pl.BlockSpec((1, 1), lambda b, k: (0, 0)),     # b2[1]-b2[0]
            ],
            out_specs=pl.BlockSpec((TB, 2), lambda b, k: (b, 0)),
            scratch_shapes=[pltpu.VMEM((TB, H), jnp.float32)],
        ),
        compiler_params=pltpu.CompilerParams(
            dimension_semantics=("parallel", "arbitrary"),
            vmem_limit_bytes=budget,
        ),
    )(x, w1_bf, b1_f, wdiff, bdiff)

    return out[:B] if B_pad != B else out


def init_params(key, dic_size):
    """Deterministic init mimicking nn.Linear's U(-1/sqrt(fan_in), 1/sqrt(fan_in))."""
    hidden = dic_size // 64
    k1, k2, k3, k4 = jax.random.split(key, 4)

    bound1 = 1.0 / jnp.sqrt(dic_size)
    w1 = jax.random.uniform(k1, (dic_size, hidden), jnp.float32, -bound1, bound1)
    b1 = jax.random.uniform(k2, (1, hidden), jnp.float32, -bound1, bound1)

    bound2 = 1.0 / jnp.sqrt(hidden)
    w2 = jax.random.uniform(k3, (hidden, 2), jnp.float32, -bound2, bound2)
    b2 = jax.random.uniform(k4, (1, 2), jnp.float32, -bound2, bound2)
    return w1, b1, w2, b2


def reference_forward(x, w1, b1, w2, b2):
    h = jnp.maximum(x @ w1 + b1, 0.0)
    logits = h @ w2 + b2
    return jax.nn.log_softmax(logits, axis=-1)


if __name__ == "__main__":
    key = jax.random.PRNGKey(0)
    dic_size = 2048          # -> hidden = 32, output classes = 2
    batch = 16               # -> 2 batch tiles of 8 rows (exercises both v7x TCs)

    k_x, k_p = jax.random.split(key)
    x = jax.random.normal(k_x, (batch, dic_size), jnp.float32)
    w1, b1, w2, b2 = init_params(k_p, dic_size)

    out = net_forward(x, w1, b1, w2, b2)
    jax.block_until_ready(out)

    # sanity: shape, rows exp-sum to 1, and matches the f32 reference
    assert out.shape == (batch, 2)
    row_sums = jnp.sum(jnp.exp(out), axis=-1)
    assert bool(jnp.all(jnp.abs(row_sums - 1.0) < 1e-3))

    ref = reference_forward(x, w1, b1, w2, b2)
    assert bool(jnp.allclose(out, ref, atol=5e-2, rtol=5e-2))

    print("KERNEL_OK")
</pallas_src>

<mosaic_0001>
module attributes {stable_mosaic.version = 11 : i64} {
  func.func @_mlp_head_kernel(%arg0: i32, %arg1: i32, %arg2: memref<8x2048xf32, #tpu.memory_space<vmem>>, %arg3: memref<2048x32xbf16, #tpu.memory_space<vmem>>, %arg4: memref<1x32xf32, #tpu.memory_space<vmem>>, %arg5: memref<1x32xf32, #tpu.memory_space<vmem>>, %arg6: memref<1x1xf32, #tpu.memory_space<vmem>>, %arg7: memref<8x2xf32, #tpu.memory_space<vmem>>, %arg8: memref<8x32xf32, #tpu.memory_space<vmem>>) attributes {dimension_semantics = [#tpu.dimension_semantics<parallel>, #tpu.dimension_semantics<arbitrary>], iteration_bounds = array<i64: 2, 1>, scalar_prefetch = 0 : i64, scratch_operands = 1 : i64, tpu.core_type = #tpu.core_type<tc>, window_params = [{transform_indices = @transform_0, window_bounds = array<i64: 8, 2048>}, {transform_indices = @transform_1, window_bounds = array<i64: 2048, 32>}, {pipeline_mode = #tpu.pipeline_mode<synchronous>, transform_indices = @transform_2, window_bounds = array<i64: 1, 32>}, {pipeline_mode = #tpu.pipeline_mode<synchronous>, transform_indices = @transform_3, window_bounds = array<i64: 1, 32>}, {pipeline_mode = #tpu.pipeline_mode<synchronous>, transform_indices = @transform_4, window_bounds = array<i64: 1, 1>}, {transform_indices = @transform_5, window_bounds = array<i64: 8, 2>}]} {
    %c0_i32 = arith.constant 0 : i32
    %0 = arith.cmpi eq, %arg1, %c0_i32 : i32
    %1 = arith.extui %0 : i1 to i32
    %c0_i32_0 = arith.constant 0 : i32
    %2 = arith.cmpi ne, %1, %c0_i32_0 : i32
    scf.if %2 {
      %cst_10 = arith.constant 0.000000e+00 : f32
      %13 = vector.broadcast %cst_10 : f32 to vector<8x32xf32>
      %c0_11 = arith.constant 0 : index
      %c0_12 = arith.constant 0 : index
      %14 = vector.load %arg8[%c0_11, %c0_12] : memref<8x32xf32, #tpu.memory_space<vmem>>, vector<8x32xf32>
      tpu.vector_store %arg8[%c0_11, %c0_12], %13 {strides = array<i32>} : memref<8x32xf32, #tpu.memory_space<vmem>>, vector<8x32xf32>,
    } else {
    }
    %c0 = arith.constant 0 : index
    %c0_1 = arith.constant 0 : index
    %3 = vector.load %arg8[%c0, %c0_1] : memref<8x32xf32, #tpu.memory_space<vmem>>, vector<8x32xf32>
    %c0_2 = arith.constant 0 : index
    %c0_3 = arith.constant 0 : index
    %4 = vector.load %arg2[%c0_2, %c0_3] : memref<8x2048xf32, #tpu.memory_space<vmem>>, vector<8x2048xf32>
    %5 = arith.truncf %4 : vector<8x2048xf32> to vector<8x2048xbf16>
    %c0_4 = arith.constant 0 : index
    %c0_5 = arith.constant 0 : index
    %6 = vector.load %arg3[%c0_4, %c0_5] : memref<2048x32xbf16, #tpu.memory_space<vmem>>, vector<2048x32xbf16>
    %cst = arith.constant dense<0.000000e+00> : vector<8x32xf32>
    %7 = tpu.matmul %5, %6, %cst {dimension_numbers = #tpu.dot_dimension_numbers<[1], [0], [0], [1], [0, 0, 1, 1], [], []>} : vector<8x2048xbf16>, vector<2048x32xbf16>, vector<8x32xf32> -> vector<8x32xf32>
    %8 = arith.addf %3, %7 : vector<8x32xf32>
    %c0_6 = arith.constant 0 : index
    %c0_7 = arith.constant 0 : index
    %9 = vector.load %arg8[%c0_6, %c0_7] : memref<8x32xf32, #tpu.memory_space<vmem>>, vector<8x32xf32>
    tpu.vector_store %arg8[%c0_6, %c0_7], %8 {strides = array<i32>} : memref<8x32xf32, #tpu.memory_space<vmem>>, vector<8x32xf32>,
    %c0_i32_8 = arith.constant 0 : i32
    %10 = arith.cmpi eq, %arg1, %c0_i32_8 : i32
    %11 = arith.extui %10 : i1 to i32
    %c0_i32_9 = arith.constant 0 : i32
    %12 = arith.cmpi ne, %11, %c0_i32_9 : i32
    scf.if %12 {
      %c0_10 = arith.constant 0 : index
      %c0_11 = arith.constant 0 : index
      %13 = vector.load %arg8[%c0_10, %c0_11] : memref<8x32xf32, #tpu.memory_space<vmem>>, vector<8x32xf32>
      %c0_12 = arith.constant 0 : index
      %c0_13 = arith.constant 0 : index
      %14 = vector.load %arg4[%c0_12, %c0_13] : memref<1x32xf32, #tpu.memory_space<vmem>>, vector<1x32xf32>
      %15 = vector.broadcast %14 : vector<1x32xf32> to vector<8x32xf32>
      %16 = arith.addf %13, %15 : vector<8x32xf32>
      %cst_14 = arith.constant 0.000000e+00 : f32
      %17 = vector.broadcast %cst_14 : f32 to vector<8x32xf32>
      %18 = arith.maximumf %16, %17 : vector<8x32xf32>
      %c0_15 = arith.constant 0 : index
      %c0_16 = arith.constant 0 : index
      %19 = vector.load %arg5[%c0_15, %c0_16] : memref<1x32xf32, #tpu.memory_space<vmem>>, vector<1x32xf32>
      %20 = vector.broadcast %19 : vector<1x32xf32> to vector<8x32xf32>
      %21 = arith.mulf %18, %20 : vector<8x32xf32>
      %cst_17 = arith.constant dense<0.000000e+00> : vector<8xf32>
      %22 = vector.multi_reduction <add>, %21, %cst_17 [1] : vector<8x32xf32> to vector<8xf32>
      %23 = vector.shape_cast %22 : vector<8xf32> to vector<8x1xf32>
      %c0_18 = arith.constant 0 : index
      %c0_19 = arith.constant 0 : index
      %24 = vector.load %arg6[%c0_18, %c0_19] : memref<1x1xf32, #tpu.memory_space<vmem>>, vector<1x1xf32>
      %25 = vector.broadcast %24 : vector<1x1xf32> to vector<8x1xf32>
      %26 = arith.addf %23, %25 : vector<8x1xf32>
      %cst_20 = arith.constant 0.000000e+00 : f32
      %27 = vector.broadcast %cst_20 : f32 to vector<8x1xf32>
      %28 = arith.maximumf %26, %27 : vector<8x1xf32>
      %29 = math.absf %26 : vector<8x1xf32>
      %cst_21 = arith.constant 0.000000e+00 : f32
      %30 = vector.broadcast %cst_21 : f32 to vector<8x1xf32>
      %31 = arith.subf %30, %29 : vector<8x1xf32>
      %32 = math.exp %31 : vector<8x1xf32>
      %cst_22 = arith.constant 1.000000e+00 : f32
      %33 = vector.broadcast %cst_22 : f32 to vector<8x1xf32>
      %34 = arith.addf %33, %32 : vector<8x1xf32>
      %35 = math.log %34 : vector<8x1xf32>
      %36 = arith.addf %28, %35 : vector<8x1xf32>
      %37 = vector.shape_cast %36 : vector<8x1xf32> to vector<8x1xf32>
      %38 = vector.broadcast %37 : vector<8x1xf32> to vector<8x2xf32>
      %39 = vector.shape_cast %26 : vector<8x1xf32> to vector<8x1xf32>
      %40 = vector.broadcast %39 : vector<8x1xf32> to vector<8x2xf32>
      %41 = tpu.iota {dimensions = array<i32: 1>} : vector<8x2xi32>
      %c0_i32_23 = arith.constant 0 : i32
      %42 = vector.broadcast %c0_i32_23 : i32 to vector<8x2xi32>
      %43 = arith.cmpi eq, %41, %42 : vector<8x2xi32>
      %cst_24 = arith.constant 0.000000e+00 : f32
      %44 = vector.broadcast %cst_24 : f32 to vector<8x2xf32>
      %45 = arith.subf %44, %38 : vector<8x2xf32>
      %46 = arith.subf %40, %38 : vector<8x2xf32>
      %47 = arith.select %43, %45, %46 : vector<8x2xi1>, vector<8x2xf32>
      %c0_25 = arith.constant 0 : index
      %c0_26 = arith.constant 0 : index
      %48 = vector.load %arg7[%c0_25, %c0_26] : memref<8x2xf32, #tpu.memory_space<vmem>>, vector<8x2xf32>
      tpu.vector_store %arg7[%c0_25, %c0_26], %47 {strides = array<i32>} : memref<8x2xf32, #tpu.memory_space<vmem>>, vector<8x2xf32>,
    } else {
    }
    return
  }
  func.func @transform_0(%arg0: i32, %arg1: i32) -> (i32, i32) {
    %c0_i32 = arith.constant 0 : i32
    return %arg0, %arg1 : i32, i32
  }
  func.func @transform_1(%arg0: i32, %arg1: i32) -> (i32, i32) {
    %c0_i32 = arith.constant 0 : i32
    %c0_i32_0 = arith.constant 0 : i32
    return %arg1, %c0_i32 : i32, i32
  }
  func.func @transform_2(%arg0: i32, %arg1: i32) -> (i32, i32) {
    %c0_i32 = arith.constant 0 : i32
    %c0_i32_0 = arith.constant 0 : i32
    %c0_i32_1 = arith.constant 0 : i32
    return %c0_i32, %c0_i32_0 : i32, i32
  }
  func.func @transform_3(%arg0: i32, %arg1: i32) -> (i32, i32) {
    %c0_i32 = arith.constant 0 : i32
    %c0_i32_0 = arith.constant 0 : i32
    %c0_i32_1 = arith.constant 0 : i32
    return %c0_i32, %c0_i32_0 : i32, i32
  }
  func.func @transform_4(%arg0: i32, %arg1: i32) -> (i32, i32) {
    %c0_i32 = arith.constant 0 : i32
    %c0_i32_0 = arith.constant 0 : i32
    %c0_i32_1 = arith.constant 0 : i32
    return %c0_i32, %c0_i32_0 : i32, i32
  }
  func.func @transform_5(%arg0: i32, %arg1: i32) -> (i32, i32) {
    %c0_i32 = arith.constant 0 : i32
    %c0_i32_0 = arith.constant 0 : i32
    return %arg0, %c0_i32 : i32, i32
  }
}

</mosaic_0001>

<bundles_post_ra>
// kernel: net_forward.1
= control target key start
LH: loop header
LB: loop body
LE: loop exit
PB: predicated region body
PF: predicated region fallthrough
CT: control target
= control target key end

     0   :  { %s2986_s0 = inlined_call_operand.hbm [shape: f32[16,2048], index: 0, kind: input, shape index: {}]   ;;  %s2987_s1 = inlined_call_operand.hbm [shape: bf16[2048,32], index: 1, kind: input, shape index: {}]   ;;  %s2988_s2 = inlined_call_operand.hbm [shape: f32[1,32], index: 2, kind: input, shape index: {}]   ;;  %s2989_s3 = inlined_call_operand.hbm [shape: f32[1,32], index: 3, kind: input, shape index: {}]   ;;  %s2990_s4 = inlined_call_operand.<no memory space> [shape: f32[1,1], index: 4, kind: input, shape index: {}]   ;;  %s2991_s5 = inlined_call_operand.hbm [shape: f32[16,2], index: 5, kind: output, shape index: {}]  }
   0x1   :  { %v10_v0 = vstv %s2990_s4 }
   0x2   :  { %11 = vst [vmem:[#allocation3] sm:$0x1] %v10_v0 }
   0x3   :  { %12 = vsyncpa [#allocation5], 0 }
   0x4   :  { %14 = vsyncpa [#allocation5 + $0x1], 0 }
   0x5   :  { %15 = vsyncpa [#allocation8], 0 }
   0x6   :  { %16 = vsyncpa [#allocation11], 0 }
   0x7   :  { %17 = vsyncpa [#allocation6], 0 }
   0x8   :  { %19 = vsyncpa [#allocation6 + $0x1], 0  ;;  %s2688_s20 = smov 0   ;;  %s2690_s21 = smov 0  }
   0x9   :  { %s2692_s22 = smov 0   ;;  %s2694_s23 = smov 0  }
   0xa   :  { %s2696_s24 = smov 0   ;;  %s2698_s25 = smov 0  }
   0xb LB: > { %s1881_s4 = sadd.s32 4294967295, %s2644_s25   ;;  %s1882_s26 = sadd.s32 4294967294, %s2644_s25   ;;  %s2644_s25 = sphi %s2698_s25, %s25_s25   ;;  %s2640_s24 = sphi %s2696_s24, %s3018_s24   ;;  %s2636_s23 = sphi %s2694_s23, %s3017_s23   ;;  %s2632_s22 = sphi %s2692_s22, %s3016_s22   ;;  %s2628_s21 = sphi %s2690_s21, %s3015_s21   ;;  %s2624_s20 = sphi %s2688_s20, %s3014_s20  }
   0xc   : > { %p59_p0 = scmp.ne.s32.totalorder %s2628_s21, %s2624_s20  ;;  %p2722_p1 = scmp.eq.s32.totalorder %s1881_s4, 0 }
   0xd   : > { %p2726_p2 = scmp.eq.s32.totalorder %s1881_s4, 1  ;;  %p178_p3 = scmp.eq.s32.totalorder %s1882_s26, 1 }
   0xe   : > { %s2997_s27 = scalar_select %p2722_p1, 1, 0 }
   0xf   : > { %s2998_s28 = scalar_select %p2726_p2, 1, 0 }
  0x10   : > { %p2732_p4 = por %p2722_p1, %p59_p0  ;;  %p1883_p5 = scmp.ge.s32.totalorder %s2644_s25, 1 }
  0x11   : > { %p2737_p6 = por %p178_p3, %p59_p0  ;;  %p185_p7 = scmp.lt.s32.totalorder %s2644_s25, 3 }
  0x12   : > { %s2999_s29 = scalar_select %p2732_p4, 1, 0 }
  0x13   : > { %s3000_s30 = scalar_select %p2737_p6, 1, 0 }
  0x14   : > { %p2742_p8 = pnand %p1883_p5, %p185_p7  ;;  %s2646_s7 = smov [#allocation7]  }
  0x15   : > { %3001 = sst [smem:[#allocation17_spill]] %s3000_s30  ;;  %s200_s8 = sshll.u32 %s2646_s7, 4  ;;  %s2746_s8 = int_to_ptr.vmem [resolvable:$true] %s200_s8 }
  0x16   : > { %s3002_s6 = scalar_select %p2742_p8, 1, 0 }
  0x17   : > { %p2225_p9 = pneg %p2742_p8  ;;  %s2647_s10 = smov [#allocation9]  }
  0x18   : > { %s214_s11 = sshll.u32 %s2647_s10, 4  ;;  %s2648_s12 = smov [#allocation10]   ;;  %s2757_s11 = int_to_ptr.vmem [resolvable:$true] %s214_s11 }
  0x19   : > { %p2753_p11 = pnand %p2225_p9, %p2722_p1  ;;  %s2759_s13 = sshll.u32 %s2648_s12, 4  ;;  %s226_s13 = int_to_ptr.vmem [resolvable:$true] %s2759_s13 }
  0x1a   : > { %s2440_s16 = scalar_lea.hbm %s2987_s1, 16384 }
  0x1b   : > { %p2441_p12 = scmp.ne.s32.totalorder %s2987_s1, %s2440_s16  ;;  %p2769_p13 = pneg %p2753_p11 }
  0x1c   : > { %p2447_p5 = scmp.lt.u32.totalorder %s2440_s16, %s2987_s1 }
  0x1d   : > { %p2443_p0 = pnand %p2769_p13, %p2441_p12 }
  0x1f   : > { %p2444_p3 = pneg %p2443_p0 }
  0x21   : > { %p2449_p7 = pnand %p2447_p5, %p2444_p3 }
  0x23   : > { %2452 = shalt.err (!%p2449_p7)
}
  0x24   : > { %s2453_s7 = scalar_lea.vmem %s2746_s8, 16384  ;;  %p2461_p1 = scmp.lt.s32.totalorder %s2746_s8, %s2746_s8 }
  0x25   : > { %p2454_p9 = scmp.ne.s32.totalorder %s2746_s8, %s2453_s7  ;;  %p2462_p4 = scmp.lt.s32.totalorder %s2453_s7, %s2453_s7 }
  0x27   : > { %p2456_p10 = pnand %p2454_p9, %p2769_p13  ;;  %p2463_p12 = por %p2462_p4, %p2461_p1 }
  0x29   : > { %p2457_p6 = pneg %p2456_p10 }
  0x2b   : > { %p2464_p0 = pnand %p2463_p12, %p2457_p6 }
  0x2d   : > { %2467 = shalt.err (!%p2464_p0)
}
  0x2e   : > { %s2649_s10 = smov 64   ;;  %s2650_s12 = smov 4  }
  0x2f   : > { %2228 = dma.hbm_to_vmem [thread:$0]  (!%p2753_p11), %s2987_s1, 16384, %s2746_s8, [#allocation8], %s2649_s10, %s2649_s10, %s2650_s12  }
  0x30   : > { %s2468_s18 = scalar_lea.hbm %s2988_s2, 16 }
  0x31   : > { %p2469_p1 = scmp.ne.s32.totalorder %s2988_s2, %s2468_s18  ;;  %p2475_p10 = scmp.lt.u32.totalorder %s2468_s18, %s2988_s2 }
  0x33   : > { %p2471_p4 = pnand %p2469_p1, %p2769_p13 }
  0x35   : > { %p2472_p6 = pneg %p2471_p4 }
  0x37   : > { %p2477_p3 = pnand %p2475_p10, %p2472_p6 }
  0x39   : > { %2480 = shalt.err (!%p2477_p3)
}
  0x3a   : > { %s2481_s8 = scalar_lea.vmem %s2757_s11, 16  ;;  %s2488_s10 = scalar_lea.vmem %s2757_s11, 32 }
  0x3b   : > { %p2482_p5 = scmp.ne.s32.totalorder %s2757_s11, %s2481_s8  ;;  %p2489_p12 = scmp.lt.s32.totalorder %s2757_s11, %s2757_s11 }
  0x3c   : > { %p2490_p0 = scmp.lt.s32.totalorder %s2488_s10, %s2481_s8 }
  0x3d   : > { %p2484_p7 = pnand %p2482_p5, %p2769_p13 }
  0x3e   : > { %p2491_p1 = por %p2490_p0, %p2489_p12 }
  0x3f   : > { %p2485_p9 = pneg %p2484_p7 }
  0x41   : > { %p2492_p4 = pnand %p2491_p1, %p2485_p9 }
  0x43   : > { %2495 = shalt.err (!%p2492_p4)
}
  0x44   : > { %2231 = dma.hbm_to_vmem [thread:$0]  (!%p2753_p11), %s2988_s2, 16, %s2757_s11, [#allocation8]  }
  0x45   : > { %s2496_s16 = scalar_lea.hbm %s2989_s3, 16 }
  0x46   : > { %p2497_p6 = scmp.ne.s32.totalorder %s2989_s3, %s2496_s16  ;;  %p2503_p5 = scmp.lt.u32.totalorder %s2496_s16, %s2989_s3 }
  0x48   : > { %p2499_p10 = pnand %p2497_p6, %p2769_p13 }
  0x4a   : > { %p2500_p3 = pneg %p2499_p10 }
  0x4c   : > { %p2505_p7 = pnand %p2503_p5, %p2500_p3 }
  0x4e   : > { %2508 = shalt.err (!%p2505_p7)
}
  0x4f   : > { %s2509_s7 = scalar_lea.vmem %s226_s13, 16  ;;  %s2516_s11 = scalar_lea.vmem %s226_s13, 32 }
  0x50   : > { %p2510_p9 = scmp.ne.s32.totalorder %s226_s13, %s2509_s7  ;;  %p2517_p1 = scmp.lt.s32.totalorder %s226_s13, %s226_s13 }
  0x51   : > { %p2518_p4 = scmp.lt.s32.totalorder %s2516_s11, %s2509_s7 }
  0x52   : > { %p2512_p12 = pnand %p2510_p9, %p2769_p13 }
  0x53   : > { %p2519_p8 = por %p2518_p4, %p2517_p1 }
  0x54   : > { %p2513_p0 = pneg %p2512_p12 }
  0x56   : > { %p2520_p2 = pnand %p2519_p8, %p2513_p0 }
  0x58   : > { %2523 = shalt.err (!%p2520_p2)
}
  0x59   : > { %2234 = dma.hbm_to_vmem [thread:$0]  (!%p2753_p11), %s2989_s3, 16, %s226_s13, [#allocation11]  }
  0x5a   : > { %s46_s19 = sadd.s32 1, %s2632_s22  ;;  %s37_s30 = sadd.s32 1, %s2640_s24 }
  0x5b   : > { %p53_p2 = scmp.ne.s32.totalorder %s2632_s22, %s2628_s21  ;;  %p39_p8 = scmp.ge.s32.totalorder %s37_s30, 2 }
  0x5c   : > { %p54_p13 = scmp.eq.s32.totalorder %s2644_s25, 0  ;;  %p3005_p6 = scmp.ne.s32.totalorder %s2998_s28, 0 }
  0x5d   : > { %p2246_p3 = scmp.lt.s32.totalorder %s2644_s25, 2  ;;  %s3020_s30 = smov (%p39_p8, %s37_s30), 0 }
  0x5e   : > { %p2840_p10 = por %p3005_p6, %p53_p2  ;;  %p55_p5 = por %p54_p13, %p53_p2 }
  0x5f   : > { %s239_s12 = sand.u32 1, %s2632_s22   ;;  %s41_s14 = ssub.s32 %s2640_s24, %s3020_s30 }
  0x60   : > { %p44_p7 = scmp.eq.s32.totalorder %s41_s14, 0  ;;  %s1888_s13 = sshll.u32 %s239_s12, 7 }
  0x61   : > { %s2032_s15 = sshll.u32 %s2640_s24, 11  ;;  %s243_s4 = scalar_lea.vmem [#allocation4], %s1888_s13 }
  0x62   : > { %s2852_s16 = scalar_select %p44_p7, %s2632_s22, %s46_s19  }
  0x63   : > { %s2857_s28 = scalar_lea.hbm %s2986_s0, %s2032_s15  ;;  %s253_s26 = sshll.u32 %s243_s4, 4  ;;  %s2859_s26 = int_to_ptr.vmem [resolvable:$true] %s253_s26 }
  0x64   : > { %p2863_p11 = pnand %p2246_p3, %p55_p5  ;;  %s240_s11 = scalar_lea.sflag [#allocation5], %s239_s12 }
  0x65   : > { %s2524_s8 = scalar_lea.hbm %s2857_s28, 2048  ;;  %s2529_s14 = scalar_lea.hbm %s2986_s0, 4096 }
  0x66   : > { %p2525_p9 = scmp.ne.s32.totalorder %s2857_s28, %s2524_s8  ;;  %p2526_p12 = pneg %p2863_p11 }
  0x67   : > { %p2530_p4 = scmp.lt.u32.totalorder %s2857_s28, %s2986_s0  ;;  %p2531_p2 = scmp.lt.u32.totalorder %s2529_s14, %s2524_s8 }
  0x68   : > { %p2527_p0 = pnand %p2526_p12, %p2525_p9  ;;  %p2533_p13 = scmp.lt.u32.totalorder %s2524_s8, %s2857_s28 }
  0x69   : > { %p2532_p8 = por %p2531_p2, %p2530_p4 }
  0x6a   : > { %p2528_p1 = pneg %p2527_p0 }
  0x6b   : > { %p2534_p6 = por %p2533_p13, %p2532_p8 }
  0x6d   : > { %p2535_p3 = pnand %p2534_p6, %p2528_p1 }
  0x6f   : > { %2538 = shalt.err (!%p2535_p3)
}
  0x70   : > { %s2539_s12 = scalar_lea.vmem %s2859_s26, 2048  ;;  %s2651_s17 = smov [#allocation4]  }
  0x71   : > { %p2540_p5 = scmp.ne.s32.totalorder %s2859_s26, %s2539_s12  ;;  %s2544_s18 = sshll.u32 %s2651_s17, 4  ;;  %s2545_s18 = int_to_ptr.vmem [resolvable:$false] %s2544_s18 }
  0x72   : > { %s2546_s4 = scalar_lea.vmem %s2545_s18, 4096  ;;  %p2547_p0 = scmp.lt.s32.totalorder %s2859_s26, %s2545_s18 }
  0x73   : > { %p2542_p7 = pnand %p2540_p5, %p2526_p12  ;;  %p2548_p4 = scmp.lt.s32.totalorder %s2546_s4, %s2539_s12 }
  0x75   : > { %p2543_p9 = pneg %p2542_p7  ;;  %p2549_p2 = por %p2548_p4, %p2547_p0 }
  0x77   : > { %p2550_p8 = pnand %p2549_p2, %p2543_p9 }
  0x79   : > { %2553 = shalt.err (!%p2550_p8)
}
  0x7a   : > { %2238 = dma.hbm_to_vmem [thread:$0]  (!%p2863_p11), %s2857_s28, 2048, %s2859_s26, %s240_s11  }
  0x7b   : > { %p3008_p1 = scmp.ne.s32.totalorder %s3002_s6, 0 }
  0x7c   : > { %s2895_s8 = sand.u32 (!%p3008_p1), 1, %s2628_s21   ;;  %p3009_p12 = scmp.ne.s32.totalorder (!%p3008_p1), %s2999_s29, 0 }
  0x7d   : > { %262 = sbr.rel (%p3008_p1) target bundleno = 827 (0x33b), region = 40  ;;  %s1892_s10 = sshll.u32 (!%p3008_p1), %s2895_s8, 7 }
  0x7e   : > { %s265_s19 = scalar_lea.sflag (!%p3008_p1), [#allocation5], %s2895_s8  ;;  %s2899_s14 = scalar_lea.vmem (!%p3008_p1), [#allocation4], %s1892_s10 }
  0x84   : > { %2607 = dma.done.wait (%p3009_p12), %s265_s19, 2048  }
  0x85   : > { %2609 = vsyncadd (%p3009_p12), %s265_s19, 4294965248  ;;  %p3010_p11 = scmp.ne.s32.totalorder %s2997_s27, 0 }
  0x87   : > { %2611 = dma.done.wait (%p3010_p11), [#allocation8], 16400  }
  0x88   : > { %2613 = vsyncadd (%p3010_p11), [#allocation8], 4294950896 }
  0x89   : > { %2615 = dma.done.wait (%p3010_p11), [#allocation11], 16  }
  0x8a   : > { %2617 = vsyncadd (%p3010_p11), [#allocation11], 4294967280  ;;  %v2308_v1 = vld [vmem:[#allocation7 + $0x40] sm:$0xff]   ;;  %v2312_v5 = vld [vmem:[#allocation7 + $0x48] sm:$0xff]   ;;  %vm314_vm0 = vcmask 261120   ;;  %s1896_s27 = sshll.u32 %s2895_s8, 3 }
  0x8b   : > { %v2309_v2 = vld [vmem:[#allocation7 + $0xc0] sm:$0xff]   ;;  %2033 = vmatprep.subr.bf16.mxu0 %v2308_v1  ;;  %v2313_v6 = vld [vmem:[#allocation7 + $0xc8] sm:$0xff]   ;;  %v2316_v9 = vld [vmem:[#allocation7 + $0x50] sm:$0xff]   ;;  %s2029_s29 = sshll.u32 %s2636_s23, 7  ;;  %s306_s6 = scalar_lea.vmem [#allocation12], %s1896_s27  ;;  %vm1753_vm2 = vcmask 15360  }
  0x8c   : > { %v2310_v3 = vld [vmem:[#allocation7] sm:$0xff]   ;;  %2055 = vmatprep.subr.bf16.mxu1 %v2309_v2  ;;  %v2314_v7 = vld [vmem:[#allocation7 + $0x8] sm:$0xff]   ;;  %v2317_v10 = vld [vmem:[#allocation7 + $0xd0] sm:$0xff]   ;;  %s1769_s28 = sshll.u32 %s306_s6, 4  ;;  %s2937_s11 = scalar_lea.hbm %s2991_s5, %s2029_s29  ;;  %s2939_s28 = int_to_ptr.vmem [resolvable:$true] %s1769_s28 }
  0x8d   : > { %v2311_v4 = vld [vmem:[#allocation7 + $0x80] sm:$0xff]   ;;  %2034 = vmatpush3.bf16.msra.mxu0 %v2310_v3  ;;  %v2315_v8 = vld [vmem:[#allocation7 + $0x88] sm:$0xff]   ;;  %v2318_v11 = vld [vmem:[#allocation7 + $0x10] sm:$0xff]   ;;  %s1756_s23 = scalar_lea.sflag [#allocation6], %s2895_s8  ;;  %s2554_s13 = scalar_lea.vmem %s2939_s28, 128 }
  0x8e   : > { %2056 = vmatpush3.bf16.msra.mxu1 %v2311_v4  ;;  %2035 = vmatprep.subr.bf16.mxu0 %v2312_v5  ;;  %v2319_v12 = vld [vmem:[#allocation7 + $0x90] sm:$0xff]   ;;  %v2320_v13 = vld [vmem:[#allocation7 + $0x58] sm:$0xff]   ;;  %v2324_v17 = vld [vmem:[#allocation7 + $0x60] sm:$0xff]   ;;  %p2555_p13 = scmp.ne.s32.totalorder %s2939_s28, %s2554_s13  ;;  %s2654_s15 = smov [#allocation12]  }
  0x8f   : > { %2057 = vmatprep.subr.bf16.mxu1 %v2313_v6  ;;  %v2321_v14 = vld [vmem:[#allocation7 + $0xd8] sm:$0xff]   ;;  %v2325_v18 = vld [vmem:[#allocation7 + $0xe0] sm:$0xff]   ;;  %v2328_v21 = vld [vmem:[#allocation7 + $0x68] sm:$0xff]   ;;  %s2558_s12 = sshll.u32 %s2654_s15, 4  ;;  %s2559_s12 = int_to_ptr.vmem [resolvable:$false] %s2558_s12 }
  0x90   : > { %v2322_v15 = vld [vmem:[#allocation7 + $0x18] sm:$0xff]   ;;  %v2326_v19 = vld [vmem:[#allocation7 + $0x20] sm:$0xff]   ;;  %v2329_v22 = vld [vmem:[#allocation7 + $0xe8] sm:$0xff]   ;;  %p2556_p6 = pnand %p2555_p13, %p2840_p10  ;;  %s2560_s17 = scalar_lea.vmem %s2559_s12, 256 }
  0x91   : > { %2036 = vmatpush3.bf16.msra.mxu0 %v2314_v7  ;;  %v2323_v16 = vld [vmem:[#allocation7 + $0x98] sm:$0xff]   ;;  %v2327_v20 = vld [vmem:[#allocation7 + $0xa0] sm:$0xff]   ;;  %v2330_v23 = vld [vmem:[#allocation7 + $0x28] sm:$0xff]   ;;  %p2561_p5 = scmp.lt.s32.totalorder %s2939_s28, %s2559_s12  ;;  %p2562_p7 = scmp.lt.s32.totalorder %s2560_s17, %s2554_s13 }
  0x92   : > { %2058 = vmatpush3.bf16.msra.mxu1 %v2315_v8  ;;  %2037 = vmatprep.subr.bf16.mxu0 %v2316_v9  ;;  %v2331_v24 = vld [vmem:[#allocation7 + $0xa8] sm:$0xff]   ;;  %v2332_v25 = vld [vmem:[#allocation7 + $0x70] sm:$0xff]   ;;  %v2336_v29 = vld [vmem:[#allocation7 + $0x78] sm:$0xff]   ;;  %p2557_p3 = pneg %p2556_p6 }
  0x93   : > { %2059 = vmatprep.subr.bf16.mxu1 %v2317_v10  ;;  %v2333_v26 = vld [vmem:[#allocation7 + $0xf0] sm:$0xff]   ;;  %v2337_v30 = vld [vmem:[#allocation7 + $0xf8] sm:$0xff]   ;;  %v318_v33 = vld [vmem:[%s2899_s14 + $0x8] sm:$0xff]  ;;  %p2563_p9 = por %p2562_p7, %p2561_p5 }
  0x94   : > { %v2334_v27 = vld [vmem:[#allocation7 + $0x30] sm:$0xff]   ;;  %v2338_v31 = vld [vmem:[#allocation7 + $0x38] sm:$0xff]   ;;  %v317_v35 = vld [vmem:[%s2899_s14] sm:$0xff]  ;;  %v334_v36 = vpack.c.bf16 %v318_v33, %v318_v33 }
  0x95   : > { %2038 = vmatpush3.bf16.msra.mxu0 %v2318_v11  ;;  %v2335_v28 = vld [vmem:[#allocation7 + $0xb0] sm:$0xff]   ;;  %v2339_v32 = vld [vmem:[#allocation7 + $0xb8] sm:$0xff]   ;;  %v333_v38 = vpack.c.bf16 %v317_v35, %v317_v35  ;;  %v2340_v41 = vld [vmem:[#allocation7 + $0x140] sm:$0xff]   ;;  %p2564_p0 = pnand %p2563_p9, %p2557_p3 }
  0x96   : > { %2060 = vmatpush3.bf16.msra.mxu1 %v2319_v12  ;;  %2039 = vmatprep.subr.bf16.mxu0 %v2320_v13  ;;  %v320_v34 = vld [vmem:[%s2899_s14 + $0x18] sm:$0xff]  ;;  %v319_v39 = vld [vmem:[%s2899_s14 + $0x10] sm:$0xff]  ;;  %v2341_v42 = vld [vmem:[#allocation7 + $0x1c0] sm:$0xff]  }
  0x97   : > { %2061 = vmatprep.subr.bf16.mxu1 %v2321_v14  ;;  %v336_v37 = vpack.c.bf16 %v320_v34, %v320_v34  ;;  %v335_v40 = vpack.c.bf16 %v319_v39, %v319_v39  ;;  %1405 = vmatprep.mubr.bf16.mxu0 %v334_v36  ;;  %v2342_v43 = vld [vmem:[#allocation7 + $0x100] sm:$0xff]   ;;  %v2344_v45 = vld [vmem:[#allocation7 + $0x148] sm:$0xff]   ;;  %v2348_v49 = vld [vmem:[#allocation7 + $0x150] sm:$0xff]  }
  0x98   : > { %v2343_v44 = vld [vmem:[#allocation7 + $0x180] sm:$0xff]   ;;  %v2345_v46 = vld [vmem:[#allocation7 + $0x1c8] sm:$0xff]   ;;  %v2349_v50 = vld [vmem:[#allocation7 + $0x1d0] sm:$0xff]  }
  0x99   : > { %2040 = vmatpush3.bf16.msra.mxu0 %v2322_v15  ;;  %1445 = vmatprep.mubr.bf16.mxu1 %v336_v37  ;;  %v2346_v47 = vld [vmem:[#allocation7 + $0x108] sm:$0xff]   ;;  %v2350_v51 = vld [vmem:[#allocation7 + $0x110] sm:$0xff]   ;;  %v2352_v53 = vld [vmem:[#allocation7 + $0x158] sm:$0xff]  }
  0x9a   : > { %2062 = vmatpush3.bf16.msra.mxu1 %v2323_v16  ;;  %2041 = vmatprep.subr.bf16.mxu0 %v2324_v17  ;;  %v2347_v48 = vld [vmem:[#allocation7 + $0x188] sm:$0xff]   ;;  %v2351_v52 = vld [vmem:[#allocation7 + $0x190] sm:$0xff]   ;;  %v2353_v54 = vld [vmem:[#allocation7 + $0x1d8] sm:$0xff]  }
  0x9b   : > { %2063 = vmatprep.subr.bf16.mxu1 %v2325_v18  ;;  %v2354_v55 = vld [vmem:[#allocation7 + $0x118] sm:$0xff]   ;;  %v2356_v57 = vld [vmem:[#allocation7 + $0x160] sm:$0xff]   ;;  %v2360_v61 = vld [vmem:[#allocation7 + $0x168] sm:$0xff]  }
  0x9c   : > { %v2355_v56 = vld [vmem:[#allocation7 + $0x198] sm:$0xff]   ;;  %v2357_v58 = vld [vmem:[#allocation7 + $0x1e0] sm:$0xff]   ;;  %v2361_v62 = vld [vmem:[#allocation7 + $0x1e8] sm:$0xff]  }
  0x9d   : > { %2042 = vmatpush3.bf16.msra.mxu0 %v2326_v19  ;;  %v2358_v59 = vld [vmem:[#allocation7 + $0x120] sm:$0xff]   ;;  %v2362_v63 = vld [vmem:[#allocation7 + $0x128] sm:$0xff]   ;;  %v2364_v1 = vld [vmem:[#allocation7 + $0x170] sm:$0xff]  }
  0x9e   : > { %2064 = vmatpush3.bf16.msra.mxu1 %v2327_v20  ;;  %2043 = vmatprep.subr.bf16.mxu0 %v2328_v21  ;;  %v2359_v60 = vld [vmem:[#allocation7 + $0x1a0] sm:$0xff]   ;;  %v2363_v0 = vld [vmem:[#allocation7 + $0x1a8] sm:$0xff]   ;;  %v2365_v2 = vld [vmem:[#allocation7 + $0x1f0] sm:$0xff]  }
  0x9f   : > { %2065 = vmatprep.subr.bf16.mxu1 %v2329_v22  ;;  %v2366_v3 = vld [vmem:[#allocation7 + $0x130] sm:$0xff]   ;;  %v2368_v5 = vld [vmem:[#allocation7 + $0x178] sm:$0xff]   ;;  %v322_v9 = vld [vmem:[%s2899_s14 + $0x28] sm:$0xff] }
  0xa0   : > { %v2367_v4 = vld [vmem:[#allocation7 + $0x1b0] sm:$0xff]   ;;  %v2369_v6 = vld [vmem:[#allocation7 + $0x1f8] sm:$0xff]   ;;  %v338_v11 = vpack.c.bf16 %v322_v9, %v322_v9  ;;  %v321_v13 = vld [vmem:[%s2899_s14 + $0x20] sm:$0xff] }
  0xa1   : > { %2044 = vmatpush3.bf16.msra.mxu0 %v2330_v23  ;;  %v2370_v7 = vld [vmem:[#allocation7 + $0x138] sm:$0xff]   ;;  %v323_v14 = vld [vmem:[%s2899_s14 + $0x30] sm:$0xff]  ;;  %v337_v15 = vpack.c.bf16 %v321_v13, %v321_v13  ;;  %v2372_v17 = vld [vmem:[#allocation7 + $0x240] sm:$0xff]  }
  0xa2   : > { %2066 = vmatpush3.bf16.msra.mxu1 %v2331_v24  ;;  %2045 = vmatprep.subr.bf16.mxu0 %v2332_v25  ;;  %v2371_v8 = vld [vmem:[#allocation7 + $0x1b8] sm:$0xff]   ;;  %v339_v16 = vpack.c.bf16 %v323_v14, %v323_v14  ;;  %v2373_v18 = vld [vmem:[#allocation7 + $0x2c0] sm:$0xff]   ;;  %v2376_v21 = vld [vmem:[#allocation7 + $0x248] sm:$0xff]  }
  0xa3   : > { %2067 = vmatprep.subr.bf16.mxu1 %v2333_v26  ;;  %v324_v10 = vld [vmem:[%s2899_s14 + $0x38] sm:$0xff]  ;;  %v2374_v19 = vld [vmem:[#allocation7 + $0x200] sm:$0xff]   ;;  %v2377_v22 = vld [vmem:[#allocation7 + $0x2c8] sm:$0xff]  }
  0xa4   : > { %v340_v12 = vpack.c.bf16 %v324_v10, %v324_v10  ;;  %v2375_v20 = vld [vmem:[#allocation7 + $0x280] sm:$0xff]   ;;  %v2378_v23 = vld [vmem:[#allocation7 + $0x208] sm:$0xff]   ;;  %v2380_v25 = vld [vmem:[#allocation7 + $0x250] sm:$0xff]  }
  0xa5   : > { %2046 = vmatpush3.bf16.msra.mxu0 %v2334_v27  ;;  %v2379_v24 = vld [vmem:[#allocation7 + $0x288] sm:$0xff]   ;;  %v2381_v26 = vld [vmem:[#allocation7 + $0x2d0] sm:$0xff]   ;;  %v2388_v33 = vld [vmem:[#allocation7 + $0x260] sm:$0xff]  }
  0xa6   : > { %2068 = vmatpush3.bf16.msra.mxu1 %v2335_v28  ;;  %2047 = vmatprep.subr.bf16.mxu0 %v2336_v29  ;;  %v2382_v27 = vld [vmem:[#allocation7 + $0x210] sm:$0xff]   ;;  %v2384_v29 = vld [vmem:[#allocation7 + $0x258] sm:$0xff]   ;;  %v2389_v34 = vld [vmem:[#allocation7 + $0x2e0] sm:$0xff]  }
  0xa7   : > { %2069 = vmatprep.subr.bf16.mxu1 %v2337_v30  ;;  %v2383_v28 = vld [vmem:[#allocation7 + $0x290] sm:$0xff]   ;;  %v2385_v30 = vld [vmem:[#allocation7 + $0x2d8] sm:$0xff]   ;;  %v2390_v35 = vld [vmem:[#allocation7 + $0x220] sm:$0xff]  }
  0xa8   : > { %v2391_v36 = vld [vmem:[#allocation7 + $0x2a0] sm:$0xff]   ;;  %v2392_v37 = vld [vmem:[#allocation7 + $0x268] sm:$0xff]  }
  0xa9   : > { %2048 = vmatpush3.bf16.msra.mxu0 %v2338_v31  ;;  %v2386_v31 = vld [vmem:[#allocation7 + $0x218] sm:$0xff]   ;;  %v2394_v39 = vld [vmem:[#allocation7 + $0x228] sm:$0xff]   ;;  %v2420_v9 = vld [vmem:[#allocation7 + $0x360] sm:$0xff]  }
  0xaa   : > { %2070 = vmatpush3.bf16.msra.mxu1 %v2339_v32  ;;  %2077 = vmatprep.subr.bf16.mxu0 %v2340_v41  ;;  %v2387_v32 = vld [vmem:[#allocation7 + $0x298] sm:$0xff]   ;;  %v2396_v41 = vld [vmem:[#allocation7 + $0x270] sm:$0xff]   ;;  %v2421_v10 = vld [vmem:[#allocation7 + $0x3e0] sm:$0xff]  }
  0xab   : > { %2099 = vmatprep.subr.bf16.mxu1 %v2341_v42  ;;  %v2397_v42 = vld [vmem:[#allocation7 + $0x2f0] sm:$0xff]   ;;  %v2424_v13 = vld [vmem:[#allocation7 + $0x368] sm:$0xff]  }
  0xac   : > { %1406 = vmatmul.mubr.bf16.vlgmr.msra.gmra.mrb[0].mxu0 %v333_v38  ;;  %v2393_v38 = vld [vmem:[#allocation7 + $0x2e8] sm:$0xff]  }
  0xad   : > { %1446 = vmatmul.mubr.bf16.vlgmr.msra.gmra.mrb[0].mxu1 %v335_v40  ;;  %2078 = vmatpush3.bf16.msra.mxu0 %v2342_v43  ;;  %v2395_v40 = vld [vmem:[#allocation7 + $0x2a8] sm:$0xff]   ;;  %v2398_v43 = vld [vmem:[#allocation7 + $0x230] sm:$0xff]  }
  0xae   : > { %2100 = vmatpush3.bf16.msra.mxu1 %v2343_v44  ;;  %2079 = vmatprep.subr.bf16.mxu0 %v2344_v45  ;;  %v2399_v44 = vld [vmem:[#allocation7 + $0x2b0] sm:$0xff]   ;;  %v2400_v45 = vld [vmem:[#allocation7 + $0x278] sm:$0xff]   ;;  %v2425_v14 = vld [vmem:[#allocation7 + $0x3e8] sm:$0xff]  }
  0xaf   : > { %2101 = vmatprep.subr.bf16.mxu1 %v2345_v46  ;;  %1485 = vmatprep.mubr.bf16.mxu0 %v338_v11  ;;  %v2401_v46 = vld [vmem:[#allocation7 + $0x2f8] sm:$0xff]   ;;  %v2422_v11 = vld [vmem:[#allocation7 + $0x320] sm:$0xff]  }
  0xb0   : > { %1525 = vmatprep.mubr.bf16.mxu1 %v340_v12  ;;  %v2423_v12 = vld [vmem:[#allocation7 + $0x3a0] sm:$0xff]  }
  0xb1   : > { %2080 = vmatpush3.bf16.msra.mxu0 %v2346_v47  ;;  %v2402_v47 = vld [vmem:[#allocation7 + $0x238] sm:$0xff]  }
  0xb2   : > { %2102 = vmatpush3.bf16.msra.mxu1 %v2347_v48  ;;  %2081 = vmatprep.subr.bf16.mxu0 %v2348_v49  ;;  %v2403_v48 = vld [vmem:[#allocation7 + $0x2b8] sm:$0xff]   ;;  %v326_v49 = vld [vmem:[%s2899_s14 + $0x48] sm:$0xff] }
  0xb3   : > { %2103 = vmatprep.subr.bf16.mxu1 %v2349_v50  ;;  %v342_v50 = vpack.c.bf16 %v326_v49, %v326_v49 }
  0xb5   : > { %2082 = vmatpush3.bf16.msra.mxu0 %v2350_v51  ;;  %v328_v51 = vld [vmem:[%s2899_s14 + $0x58] sm:$0xff] }
  0xb6   : > { %2104 = vmatpush3.bf16.msra.mxu1 %v2351_v52  ;;  %2083 = vmatprep.subr.bf16.mxu0 %v2352_v53  ;;  %v325_v52 = vld [vmem:[%s2899_s14 + $0x40] sm:$0xff]  ;;  %v327_v53 = vld [vmem:[%s2899_s14 + $0x50] sm:$0xff] }
  0xb7   : > { %2105 = vmatprep.subr.bf16.mxu1 %v2353_v54  ;;  %v344_v54 = vpack.c.bf16 %v328_v51, %v328_v51 }
  0xb9   : > { %2084 = vmatpush3.bf16.msra.mxu0 %v2354_v55  ;;  %v341_v55 = vpack.c.bf16 %v325_v52, %v325_v52 }
  0xba   : > { %2106 = vmatpush3.bf16.msra.mxu1 %v2355_v56  ;;  %2085 = vmatprep.subr.bf16.mxu0 %v2356_v57  ;;  %v343_v56 = vpack.c.bf16 %v327_v53, %v327_v53  ;;  %v2404_v57 = vld [vmem:[#allocation7 + $0x340] sm:$0xff]  }
  0xbb   : > { %2107 = vmatprep.subr.bf16.mxu1 %v2357_v58  ;;  %v2405_v58 = vld [vmem:[#allocation7 + $0x3c0] sm:$0xff]  }
  0xbd   : > { %2086 = vmatpush3.bf16.msra.mxu0 %v2358_v59  ;;  %v2406_v59 = vld [vmem:[#allocation7 + $0x300] sm:$0xff]  }
  0xbe   : > { %2108 = vmatpush3.bf16.msra.mxu1 %v2359_v60  ;;  %2087 = vmatprep.subr.bf16.mxu0 %v2360_v61  ;;  %v2407_v60 = vld [vmem:[#allocation7 + $0x380] sm:$0xff]   ;;  %v2408_v61 = vld [vmem:[#allocation7 + $0x348] sm:$0xff]  }
  0xbf   : > { %2109 = vmatprep.subr.bf16.mxu1 %v2361_v62  ;;  %v2409_v62 = vld [vmem:[#allocation7 + $0x3c8] sm:$0xff]  }
  0xc1   : > { %2088 = vmatpush3.bf16.msra.mxu0 %v2362_v63  ;;  %v2410_v63 = vld [vmem:[#allocation7 + $0x308] sm:$0xff]  }
  0xc2   : > { %2110 = vmatpush3.bf16.msra.mxu1 %v2363_v0  ;;  %2089 = vmatprep.subr.bf16.mxu0 %v2364_v1  ;;  %v2411_v0 = vld [vmem:[#allocation7 + $0x388] sm:$0xff]   ;;  %v2412_v1 = vld [vmem:[#allocation7 + $0x350] sm:$0xff]  }
  0xc3   : > { %2111 = vmatprep.subr.bf16.mxu1 %v2365_v2  ;;  %v2413_v2 = vld [vmem:[#allocation7 + $0x3d0] sm:$0xff]  }
  0xc5   : > { %2090 = vmatpush3.bf16.msra.mxu0 %v2366_v3  ;;  %v2414_v3 = vld [vmem:[#allocation7 + $0x310] sm:$0xff]  }
  0xc6   : > { %2112 = vmatpush3.bf16.msra.mxu1 %v2367_v4  ;;  %2091 = vmatprep.subr.bf16.mxu0 %v2368_v5  ;;  %v2415_v4 = vld [vmem:[#allocation7 + $0x390] sm:$0xff]   ;;  %v2416_v5 = vld [vmem:[#allocation7 + $0x358] sm:$0xff]  }
  0xc7   : > { %2113 = vmatprep.subr.bf16.mxu1 %v2369_v6  ;;  %v2417_v6 = vld [vmem:[#allocation7 + $0x3d8] sm:$0xff]  }
  0xc9   : > { %2092 = vmatpush3.bf16.msra.mxu0 %v2370_v7  ;;  %v2418_v7 = vld [vmem:[#allocation7 + $0x318] sm:$0xff]  }
  0xca   : > { %2114 = vmatpush3.bf16.msra.mxu1 %v2371_v8  ;;  %2121 = vmatprep.subr.bf16.mxu0 %v2372_v17  ;;  %v2419_v8 = vld [vmem:[#allocation7 + $0x398] sm:$0xff]   ;;  %v2428_v17 = vld [vmem:[#allocation7 + $0x370] sm:$0xff]  }
  0xcb   : > { %2143 = vmatprep.subr.bf16.mxu1 %v2373_v18  ;;  %v2429_v18 = vld [vmem:[#allocation7 + $0x3f0] sm:$0xff]  }
  0xcc   : > { %1486 = vmatmul.mubr.bf16.vlgmr.msra.gmra.mrb[4].mxu0 %v337_v15  ;;  %v2426_v15 = vld [vmem:[#allocation7 + $0x328] sm:$0xff]  }
  0xcd   : > { %1526 = vmatmul.mubr.bf16.vlgmr.msra.gmra.mrb[4].mxu1 %v339_v16  ;;  %2122 = vmatpush3.bf16.msra.mxu0 %v2374_v19  ;;  %v2427_v16 = vld [vmem:[#allocation7 + $0x3a8] sm:$0xff]   ;;  %v2430_v19 = vld [vmem:[#allocation7 + $0x330] sm:$0xff]  }
  0xce   : > { %2144 = vmatpush3.bf16.msra.mxu1 %v2375_v20  ;;  %2123 = vmatprep.subr.bf16.mxu0 %v2376_v21  ;;  %v2431_v20 = vld [vmem:[#allocation7 + $0x3b0] sm:$0xff]   ;;  %v2432_v21 = vld [vmem:[#allocation7 + $0x378] sm:$0xff]  }
  0xcf   : > { %2145 = vmatprep.subr.bf16.mxu1 %v2377_v22  ;;  %1565 = vmatprep.mubr.bf16.mxu0 %v342_v50  ;;  %v2433_v22 = vld [vmem:[#allocation7 + $0x3f8] sm:$0xff]  }
  0xd0   : > { %1605 = vmatprep.mubr.bf16.mxu1 %v344_v54 }
  0xd1   : > { %2124 = vmatpush3.bf16.msra.mxu0 %v2378_v23  ;;  %v2434_v23 = vld [vmem:[#allocation7 + $0x338] sm:$0xff]  }
  0xd2   : > { %2146 = vmatpush3.bf16.msra.mxu1 %v2379_v24  ;;  %2125 = vmatprep.subr.bf16.mxu0 %v2380_v25  ;;  %v2435_v24 = vld [vmem:[#allocation7 + $0x3b8] sm:$0xff]   ;;  %v330_v25 = vld [vmem:[%s2899_s14 + $0x68] sm:$0xff] }
  0xd3   : > { %2147 = vmatprep.subr.bf16.mxu1 %v2381_v26  ;;  %v332_v26 = vld [vmem:[%s2899_s14 + $0x78] sm:$0xff] }
  0xd5   : > { %2126 = vmatpush3.bf16.msra.mxu0 %v2382_v27  ;;  %v329_v27 = vld [vmem:[%s2899_s14 + $0x60] sm:$0xff] }
  0xd6   : > { %2148 = vmatpush3.bf16.msra.mxu1 %v2383_v28  ;;  %2127 = vmatprep.subr.bf16.mxu0 %v2384_v29  ;;  %v346_v28 = vpack.c.bf16 %v330_v25, %v330_v25  ;;  %v348_v29 = vpack.c.bf16 %v332_v26, %v332_v26  ;;  %v2653_v26 = vmov 0  }
  0xd7   : > { %2149 = vmatprep.subr.bf16.mxu1 %v2385_v30  ;;  %v345_v30 = vpack.c.bf16 %v329_v27, %v329_v27  ;;  %2307 = vset.pattern.permute.xlu1 %v2653_v26  ;;  %v2027_v27 = vld [vmem:[#allocation3] ss:$0 sm:$0xff] }
  0xd8   : > { %2306 = vset.pattern.permute.xlu0 %v2653_v26 }
  0xd9   : > { %2128 = vmatpush3.bf16.msra.mxu0 %v2386_v31  ;;  %v331_v31 = vld [vmem:[%s2899_s14 + $0x70] sm:$0xff] }
  0xda   : > { %2150 = vmatpush3.bf16.msra.mxu1 %v2387_v32  ;;  %2129 = vmatprep.subr.bf16.mxu0 %v2388_v33  ;;  %v347_v32 = vpack.c.bf16 %v331_v31, %v331_v31  ;;  %v2652_v33 = vmov 0.0  }
  0xdb   : > { %2151 = vmatprep.subr.bf16.mxu1 %v2389_v34  ;;  %315 = vst.msk [vmem:[#allocation2] sm:$0xff] %vm314_vm0, %v2652_v33 }
  0xdd   : > { %2130 = vmatpush3.bf16.msra.mxu0 %v2390_v35 }
  0xde   : > { %2152 = vmatpush3.bf16.msra.mxu1 %v2391_v36  ;;  %2131 = vmatprep.subr.bf16.mxu0 %v2392_v37 }
  0xdf   : > { %2153 = vmatprep.subr.bf16.mxu1 %v2393_v38 }
  0xe1   : > { %2132 = vmatpush3.bf16.msra.mxu0 %v2394_v39 }
  0xe2   : > { %2154 = vmatpush3.bf16.msra.mxu1 %v2395_v40  ;;  %2133 = vmatprep.subr.bf16.mxu0 %v2396_v41 }
  0xe3   : > { %2155 = vmatprep.subr.bf16.mxu1 %v2397_v42 }
  0xe5   : > { %2134 = vmatpush3.bf16.msra.mxu0 %v2398_v43 }
  0xe6   : > { %2156 = vmatpush3.bf16.msra.mxu1 %v2399_v44  ;;  %2135 = vmatprep.subr.bf16.mxu0 %v2400_v45 }
  0xe7   : > { %2157 = vmatprep.subr.bf16.mxu1 %v2401_v46 }
  0xe9   : > { %2136 = vmatpush3.bf16.msra.mxu0 %v2402_v47 }
  0xea   : > { %2158 = vmatpush3.bf16.msra.mxu1 %v2403_v48  ;;  %2165 = vmatprep.subr.bf16.mxu0 %v2404_v57 }
  0xeb   : > { %2187 = vmatprep.subr.bf16.mxu1 %v2405_v58 }
  0xec   : > { %1566 = vmatmul.mubr.bf16.vlgmr.msra.gmra.mrb[8].mxu0 %v341_v55 }
  0xed   : > { %1606 = vmatmul.mubr.bf16.vlgmr.msra.gmra.mrb[8].mxu1 %v343_v56  ;;  %2166 = vmatpush3.bf16.msra.mxu0 %v2406_v59 }
  0xee   : > { %2188 = vmatpush3.bf16.msra.mxu1 %v2407_v60  ;;  %2167 = vmatprep.subr.bf16.mxu0 %v2408_v61 }
  0xef   : > { %2189 = vmatprep.subr.bf16.mxu1 %v2409_v62  ;;  %1645 = vmatprep.mubr.bf16.mxu0 %v346_v28 }
  0xf0   : > { %1685 = vmatprep.mubr.bf16.mxu1 %v348_v29 }
  0xf1   : > { %2168 = vmatpush3.bf16.msra.mxu0 %v2410_v63 }
  0xf2   : > { %2190 = vmatpush3.bf16.msra.mxu1 %v2411_v0  ;;  %2169 = vmatprep.subr.bf16.mxu0 %v2412_v1 }
  0xf3   : > { %2191 = vmatprep.subr.bf16.mxu1 %v2413_v2 }
  0xf5   : > { %2170 = vmatpush3.bf16.msra.mxu0 %v2414_v3 }
  0xf6   : > { %2192 = vmatpush3.bf16.msra.mxu1 %v2415_v4  ;;  %2171 = vmatprep.subr.bf16.mxu0 %v2416_v5 }
  0xf7   : > { %2193 = vmatprep.subr.bf16.mxu1 %v2417_v6 }
  0xf9   : > { %2172 = vmatpush3.bf16.msra.mxu0 %v2418_v7 }
  0xfa   : > { %2194 = vmatpush3.bf16.msra.mxu1 %v2419_v8  ;;  %2173 = vmatprep.subr.bf16.mxu0 %v2420_v9 }
  0xfb   : > { %2195 = vmatprep.subr.bf16.mxu1 %v2421_v10 }
  0xfd   : > { %2174 = vmatpush3.bf16.msra.mxu0 %v2422_v11 }
  0xfe   : > { %2196 = vmatpush3.bf16.msra.mxu1 %v2423_v12  ;;  %2175 = vmatprep.subr.bf16.mxu0 %v2424_v13 }
  0xff   : > { %2197 = vmatprep.subr.bf16.mxu1 %v2425_v14 }
 0x101   : > { %2176 = vmatpush3.bf16.msra.mxu0 %v2426_v15 }
 0x102   : > { %2198 = vmatpush3.bf16.msra.mxu1 %v2427_v16  ;;  %2177 = vmatprep.subr.bf16.mxu0 %v2428_v17  ;;  %v316_v16 = vld [vmem:[#allocation2] sm:$0xff] }
 0x103   : > { %2199 = vmatprep.subr.bf16.mxu1 %v2429_v18 }
 0x105   : > { %2178 = vmatpush3.bf16.msra.mxu0 %v2430_v19  ;;  %v2025_v19 = vld [vmem:[#allocation9] ss:$0 sm:$0xff] }
 0x106   : > { %2200 = vmatpush3.bf16.msra.mxu1 %v2431_v20  ;;  %2179 = vmatprep.subr.bf16.mxu0 %v2432_v21 }
 0x107   : > { %2201 = vmatprep.subr.bf16.mxu1 %v2433_v22  ;;  %v2026_v22 = vld [vmem:[#allocation10] ss:$0 sm:$0xff] }
 0x109   : > { %2180 = vmatpush3.bf16.msra.mxu0 %v2434_v23 }
 0x10a   : > { %2202 = vmatpush3.bf16.msra.mxu1 %v2435_v24 }
 0x10c   : > { %1646 = vmatmul.mubr.bf16.vlgmr.msra.gmra.mrb[12].mxu0 %v345_v30 }
 0x10d   : > { %1686 = vmatmul.mubr.bf16.vlgmr.msra.gmra.mrb[12].mxu1 %v347_v32 }
 0x17f   : > { %v2049_v34 = vpop.f32.mrb[0].mxu0 }
 0x180   : > { %v2071_v35 = vpop.f32.mrb[0].mxu1  ;;  %v2050_v36 = vpop.f32.mrb[1].mxu0 }
 0x181   : > { %v2072_v37 = vpop.f32.mrb[1].mxu1  ;;  %v2051_v38 = vadd.f32 %v2050_v36, %v2049_v34  ;;  %v2052_v40 = vpop.f32.mrb[2].mxu0 }
 0x182   : > { %v2073_v39 = vadd.f32 %v2072_v37, %v2071_v35  ;;  %v2074_v41 = vpop.f32.mrb[2].mxu1  ;;  %v2053_v42 = vpop.f32.mrb[3].mxu0 }
 0x183   : > { %v2075_v43 = vpop.f32.mrb[3].mxu1 }
 0x184   : > { %v1448_v44 = vadd.f32 %v2073_v39, %v2051_v38  ;;  %v1747_v39 = vlaneseq }
 0x186   : > { %v1748_v40 = vand.u32 127, %v1747_v39 }
 0x188   : > { %vm1749_vm1 = vcmp.eq.s32.totalorder %v1748_v40, 0 }
 0x19f   : > { %v2093_v45 = vpop.f32.mrb[4].mxu0 }
 0x1a0   : > { %v2115_v46 = vpop.f32.mrb[4].mxu1  ;;  %v2094_v47 = vpop.f32.mrb[5].mxu0 }
 0x1a1   : > { %v2095_v48 = vadd.f32 %v2094_v47, %v2093_v45  ;;  %v2116_v49 = vpop.f32.mrb[5].mxu1  ;;  %v2096_v50 = vpop.f32.mrb[6].mxu0 }
 0x1a2   : > { %v2117_v51 = vadd.f32 %v2116_v49, %v2115_v46  ;;  %v2118_v52 = vpop.f32.mrb[6].mxu1  ;;  %v2097_v53 = vpop.f32.mrb[7].mxu0 }
 0x1a3   : > { %v1488_v54 = vadd.f32 %v2095_v48, %v1448_v44  ;;  %v2119_v55 = vpop.f32.mrb[7].mxu1 }
 0x1a5   : > { %v1528_v56 = vadd.f32 %v2117_v51, %v1488_v54 }
 0x1bf   : > { %v2137_v57 = vpop.f32.mrb[8].mxu0 }
 0x1c0   : > { %v2159_v58 = vpop.f32.mrb[8].mxu1  ;;  %v2138_v59 = vpop.f32.mrb[9].mxu0 }
 0x1c1   : > { %v2139_v60 = vadd.f32 %v2138_v59, %v2137_v57  ;;  %v2160_v61 = vpop.f32.mrb[9].mxu1  ;;  %v2140_v62 = vpop.f32.mrb[10].mxu0 }
 0x1c2   : > { %v2161_v63 = vadd.f32 %v2160_v61, %v2159_v58  ;;  %v2162_v0 = vpop.f32.mrb[10].mxu1  ;;  %v2141_v1 = vpop.f32.mrb[11].mxu0 }
 0x1c3   : > { %v1568_v2 = vadd.f32 %v2139_v60, %v1528_v56  ;;  %v2163_v3 = vpop.f32.mrb[11].mxu1 }
 0x1c5   : > { %v1608_v4 = vadd.f32 %v2161_v63, %v1568_v2 }
 0x1df   : > { %v2181_v5 = vpop.f32.mrb[12].mxu0 }
 0x1e0   : > { %v2203_v6 = vpop.f32.mrb[12].mxu1  ;;  %v2182_v7 = vpop.f32.mrb[13].mxu0 }
 0x1e1   : > { %v2204_v8 = vpop.f32.mrb[13].mxu1  ;;  %v2183_v9 = vadd.f32 %v2182_v7, %v2181_v5  ;;  %v2184_v11 = vpop.f32.mrb[14].mxu0 }
 0x1e2   : > { %v2205_v10 = vadd.f32 %v2204_v8, %v2203_v6  ;;  %v2206_v12 = vpop.f32.mrb[14].mxu1  ;;  %v2185_v13 = vpop.f32.mrb[15].mxu0 }
 0x1e3   : > { %v2207_v14 = vpop.f32.mrb[15].mxu1  ;;  %v1648_v15 = vadd.f32 %v2183_v9, %v1608_v4 }
 0x1e5   : > { %v1688_v17 = vadd.f32 %v2205_v10, %v1648_v15 }
 0x1e7   : > { %v1693_v18 = vadd.f32 %v1688_v17, %v316_v16 }
 0x1e9   : > { %1695 = vst.msk [vmem:[#allocation2] sm:$0xff] %vm314_vm0, %v1693_v18 }
 0x1f0   : > { %v1699_v20 = vld [vmem:[#allocation2] sm:$0xff] }
 0x1f1   : > { %v1707_v21 = vadd.f32 %v2025_v19, %v1699_v20 }
 0x1f3   : > { %v1708_v23 = vmax.f32 %v1707_v21, 0.0 }
 0x1f5   : > { %v1716_v24 = vmul.f32 %v2026_v22, %v1708_v23 }
 0x1f7   : > { %v1717_v25 = vsel %vm314_vm0, %v1716_v24, 0.0 }
 0x1f8   : > { %1718 = vadd.xlane.f32.xlu0 %v1717_v25 }
 0x285   : > { %v1719_v28 = vpop.xlane.xlu0 %1718 }
 0x286   : > { %v1727_v29 = vadd.f32 %v2027_v27, %v1719_v28 }
 0x288   : > { %v1729_v30 = vand.u32 2147483647, %v1727_v29  ;;  %1744 = vperm.xlu1 %2307, %v1727_v29   ;;  %v1728_v36 = vmax.f32 %v1727_v29, 0.0 }
 0x28a   : > { %v1730_v31 = vsub.f32 0.0, %v1729_v30 }
 0x28c   : > { %v1731_v32 = vmul.f32 1.442695, %v1730_v31 }
 0x28e   : > { %2436 = vpow2.f32 %v1731_v32 }
 0x298   : > { %v2437_v33 = vpop.eup %2436 }
 0x299   : > { %v1733_v34 = vadd.f32 1.0, %v2437_v33 }
 0x29b   : > { %2438 = vlog2.f32 %v1733_v34 }
 0x2a5   : > { %v2439_v35 = vpop.eup %2438 }
 0x2a6   : > { %v1735_v37 = vmul.f32 0.6931472, %v2439_v35 }
 0x2a8   : > { %v1736_v38 = vadd.f32 %v1735_v37, %v1728_v36 }
 0x2aa   : > { %1739 = vperm.xlu0 %2306, %v1736_v38  }
 0x307   : > { %v1745_v41 = vpop.permute.xlu1 %1744 }
 0x329   : > { %v1740_v42 = vpop.permute.xlu0 %1739 }
 0x32a   : > { %v1750_v43 = vsub.f32 0.0, %v1740_v42  ;;  %v1751_v44 = vsub.f32 %v1745_v41, %v1740_v42 }
 0x32c   : > { %v1752_v45 = vsel %vm1749_vm1, %v1750_v43, %v1751_v44 }
 0x32d   : > { %1754 = vst.msk [vmem:[%s306_s6] sm:$0xff] %vm1753_vm2, %v1752_v45 }
 0x32e   : > { %2567 = shalt.err (!%p2564_p0)
}
 0x32f   : > { %s2568_s18 = scalar_lea.hbm %s2937_s11, 128  ;;  %s2572_s10 = scalar_lea.hbm %s2991_s5, 256 }
 0x330   : > { %p2569_p4 = scmp.ne.s32.totalorder %s2937_s11, %s2568_s18  ;;  %p2573_p1 = scmp.lt.u32.totalorder %s2937_s11, %s2991_s5 }
 0x331   : > { %p2574_p12 = scmp.lt.u32.totalorder %s2572_s10, %s2568_s18  ;;  %p2576_p13 = scmp.lt.u32.totalorder %s2568_s18, %s2937_s11 }
 0x332   : > { %p2570_p2 = pnand %p2569_p4, %p2840_p10 }
 0x333   : > { %p2575_p11 = por %p2574_p12, %p2573_p1 }
 0x334   : > { %p2571_p8 = pneg %p2570_p2 }
 0x335   : > { %p2577_p6 = por %p2576_p13, %p2575_p11 }
 0x337   : > { %p2578_p3 = pnand %p2577_p6, %p2571_p8 }
 0x339   : > { %2581 = shalt.err (!%p2578_p3)
}
 0x33a   : > { %2223 = dma.vmem_to_hbm [thread:$0]  (%p2840_p10), %s2939_s28, 128, %s2937_s11, %s1756_s23  }
 0x33b PF: > { %s3011_s27 = sld [smem:[#allocation17_spill]]  ;;  %s1781_s29 = sand.u32 1, %s2624_s20  }
 0x33c   : > { %p3013_p7 = scmp.ge.s32.totalorder %s2644_s25, 2  ;;  %s1782_s6 = scalar_lea.sflag [#allocation6], %s1781_s29 }
 0x341   : > { %p3012_p5 = scmp.ne.s32.totalorder %s3011_s27, 0 }
 0x343   : > { %p2240_p9 = pnand %p3013_p7, %p3012_p5 }
 0x345   : > { %2619 = dma.done.wait (!%p2240_p9), %s1782_s6, 128  }
 0x346   : > { %2621 = vsyncadd (!%p2240_p9), %s1782_s6, 4294967168  ;;  %s25_s25 = sadd.s32 1, %s2644_s25   ;;  %s3014_s20 = smov %s2628_s21 }
 0x347   : > { %p22_p0 = scmp.ge.s32.totalorder %s25_s25, 4   ;;  %s3015_s21 = smov %s2632_s22 }
 0x348   : > { %s3016_s22 = smov %s2852_s16  ;;  %s3017_s23 = smov %s2640_s24 }
 0x349   : > { %s3018_s24 = smov %s3020_s30  ;;  %24 = sbr.rel (!%p22_p0) target bundleno = 11 (0xb), region = 106 }
 0x350   :  { %1787 = vsyncpa [#allocation5], 1 }
 0x351   :  { %1789 = vsyncpa [#allocation5 + $0x1], 1 }
 0x352   :  { %1790 = vsyncpa [#allocation8], 1 }
 0x353   :  { %1791 = vsyncpa [#allocation11], 1 }
 0x354   :  { %1792 = vsyncpa [#allocation6], 1 }
 0x355   :  { %1794 = vsyncpa [#allocation6 + $0x1], 1 }

</bundles_post_ra>
